<compile_context>
chip_gen: v6e
topology: v6e:2x2x1
jax: 0.10.0
libtpu: 0.0.40
codegen_flags: <defaults>
</compile_context>

<pallas_src>
import functools
import math

import jax
import jax.numpy as jnp
from jax.experimental import pallas as pl
from jax.experimental.pallas import tpu as pltpu


# --------------------------------------------------------------------------
# Hardware-aware configuration
# --------------------------------------------------------------------------
def _query_vmem_limit():
    try:
        cap = int(pltpu.get_tpu_info().vmem_capacity_bytes)
        return (cap * 3) // 4          # ~96 MiB on v5e/v6e, ~48 MiB on v7x
    except Exception:
        return 32 * 1024 * 1024        # conservative fallback


_VMEM_LIMIT = _query_vmem_limit()


def _compiler_params(dims):
    return pltpu.CompilerParams(dimension_semantics=dims,
                                vmem_limit_bytes=_VMEM_LIMIT)


def _copy_probe_kernel(x_ref, o_ref):
    o_ref[...] = x_ref[...]


def _probe_single_buffer():
    """Check whether pipeline_mode=pl.Buffered(1) is accepted on this build."""
    try:
        spec = pl.BlockSpec((8, 128), lambda i: (0, 0),
                            pipeline_mode=pl.Buffered(1))
        out = pl.pallas_call(
            _copy_probe_kernel,
            out_shape=jax.ShapeDtypeStruct((8, 128), jnp.float32),
            grid=(1,),
            in_specs=[spec],
            out_specs=pl.BlockSpec((8, 128), lambda i: (0, 0)),
        )(jnp.zeros((8, 128), jnp.float32))
        jax.block_until_ready(out)
        return True
    except Exception:
        return False


_HAS_SINGLE_BUF = _probe_single_buffer()


def _const_spec(shape):
    """BlockSpec for an operand whose block index never changes (resident).

    Single-buffered when supported: the second pipeline buffer for a
    constant-index block is pure VMEM waste.
    """
    zeros = (0,) * len(shape)
    if _HAS_SINGLE_BUF:
        return pl.BlockSpec(shape, lambda *_: zeros,
                            pipeline_mode=pl.Buffered(1))
    return pl.BlockSpec(shape, lambda *_: zeros)


def _round_up(x, m):
    return (x + m - 1) // m * m


def _pick_tm(M):
    """Largest row tile (multiple of 8, <=512) dividing M.

    M is always a multiple of 8 here because the sequence is padded to a
    multiple of 8 before the encoder runs (review fix: no tm=M fallback for
    large non-divisible M).
    """
    for tm in (512, 256, 128, 64, 32, 16, 8):
        if M % tm == 0:
            return tm
    return M


def _pick_seq_tile(S):
    for t in (256, 128, 64, 32, 16, 8):
        if S % t == 0:
            return t
    return S


def _pick_ic(I):
    """Intermediate-dim chunk: MXU-friendly (multiple of 256) when possible."""
    for c in (1536, 1024, 768, 512, 256):
        if I > c and I % c == 0:
            return c
    return I


# --------------------------------------------------------------------------
# Pallas kernels
# --------------------------------------------------------------------------
def _linear_kernel(x_ref, w_ref, b_ref, o_ref):
    # bf16 operands straight onto the MXU, f32 accumulation.
    y = jnp.dot(x_ref[...], w_ref[...], preferred_element_type=jnp.float32)
    y = y + b_ref[...].astype(jnp.float32)
    o_ref[...] = y.astype(o_ref.dtype)


def linear(x, w, b, out_dtype=None):
    """y = x @ w + b; M-tiled grid, weight resident (single-buffered) in VMEM."""
    M, K = x.shape
    N = w.shape[1]
    tm = _pick_tm(M)
    out_dtype = out_dtype or x.dtype
    return pl.pallas_call(
        _linear_kernel,
        out_shape=jax.ShapeDtypeStruct((M, N), out_dtype),
        grid=(M // tm,),
        in_specs=[pl.BlockSpec((tm, K), lambda i: (i, 0)),
                  _const_spec((K, N)),
                  _const_spec((1, N))],
        out_specs=pl.BlockSpec((tm, N), lambda i: (i, 0)),
        compiler_params=_compiler_params(("parallel",)),
    )(x, w, b.reshape(1, N))


def _layernorm_kernel(x_ref, g_ref, b_ref, o_ref, *, eps):
    x = x_ref[...].astype(jnp.float32)
    mean = jnp.mean(x, axis=-1, keepdims=True)
    var = jnp.mean(jnp.square(x - mean), axis=-1, keepdims=True)
    y = (x - mean) * jax.lax.rsqrt(var + eps)
    o_ref[...] = (y * g_ref[...].astype(jnp.float32)
                  + b_ref[...].astype(jnp.float32)).astype(o_ref.dtype)


def layernorm(x, gamma, beta, eps=1e-12, out_dtype=None):
    M, H = x.shape
    tm = _pick_tm(M)
    out_dtype = out_dtype or x.dtype
    return pl.pallas_call(
        functools.partial(_layernorm_kernel, eps=eps),
        out_shape=jax.ShapeDtypeStruct((M, H), out_dtype),
        grid=(M // tm,),
        in_specs=[pl.BlockSpec((tm, H), lambda i: (i, 0)),
                  _const_spec((1, H)),
                  _const_spec((1, H))],
        out_specs=pl.BlockSpec((tm, H), lambda i: (i, 0)),
        compiler_params=_compiler_params(("parallel",)),
    )(x, gamma.reshape(1, H), beta.reshape(1, H))


def _proj_add_ln_kernel(x_ref, w_ref, bias_ref, res_ref, g_ref, b_ref, o_ref,
                        *, eps):
    """LayerNorm(x @ w + bias + residual) — fused attention-output block."""
    y = jnp.dot(x_ref[...], w_ref[...], preferred_element_type=jnp.float32)
    y = y + bias_ref[...].astype(jnp.float32) + res_ref[...].astype(jnp.float32)
    mean = jnp.mean(y, axis=-1, keepdims=True)
    var = jnp.mean(jnp.square(y - mean), axis=-1, keepdims=True)
    yn = (y - mean) * jax.lax.rsqrt(var + eps)
    o_ref[...] = (yn * g_ref[...].astype(jnp.float32)
                  + b_ref[...].astype(jnp.float32)).astype(o_ref.dtype)


def proj_add_layernorm(x, w, bias, residual, gamma, beta, eps=1e-12):
    M, K = x.shape
    N = w.shape[1]
    tm = _pick_tm(M)
    return pl.pallas_call(
        functools.partial(_proj_add_ln_kernel, eps=eps),
        out_shape=jax.ShapeDtypeStruct((M, N), x.dtype),
        grid=(M // tm,),
        in_specs=[pl.BlockSpec((tm, K), lambda i: (i, 0)),
                  _const_spec((K, N)),
                  _const_spec((1, N)),
                  pl.BlockSpec((tm, N), lambda i: (i, 0)),
                  _const_spec((1, N)),
                  _const_spec((1, N))],
        out_specs=pl.BlockSpec((tm, N), lambda i: (i, 0)),
        compiler_params=_compiler_params(("parallel",)),
    )(x, w, bias.reshape(1, N), residual,
      gamma.reshape(1, N), beta.reshape(1, N))


def _ffn_kernel(x_ref, w1_ref, b1_ref, w2_ref, b2_ref, g_ref, b_ref, o_ref,
                acc_ref, *, eps):
    """LayerNorm(gelu(x@w1+b1)@w2 + b2 + x), streamed over I-chunks.

    Grid axis 1 walks chunks of the intermediate dimension ("arbitrary");
    partial products accumulate in an f32 scratch; bias + residual + LN run
    on the final chunk.
    """
    c = pl.program_id(1)
    nc = pl.num_programs(1)

    @pl.when(c == 0)
    def _():
        acc_ref[...] = jnp.zeros_like(acc_ref)

    h1 = jnp.dot(x_ref[...], w1_ref[...], preferred_element_type=jnp.float32)
    h1 = h1 + b1_ref[...].astype(jnp.float32)
    # TODO(synk): HF BERT uses exact erf-GELU; tanh approximation used here.
    h1 = jax.nn.gelu(h1, approximate=True)
    acc_ref[...] += jnp.dot(h1.astype(jnp.bfloat16), w2_ref[...],
                            preferred_element_type=jnp.float32)

    @pl.when(c == nc - 1)
    def _():
        y = (acc_ref[...] + b2_ref[...].astype(jnp.float32)
             + x_ref[...].astype(jnp.float32))
        mean = jnp.mean(y, axis=-1, keepdims=True)
        var = jnp.mean(jnp.square(y - mean), axis=-1, keepdims=True)
        yn = (y - mean) * jax.lax.rsqrt(var + eps)
        o_ref[...] = (yn * g_ref[...].astype(jnp.float32)
                      + b_ref[...].astype(jnp.float32)).astype(o_ref.dtype)


def ffn_add_layernorm(x, w1, b1, w2, b2, gamma, beta, eps=1e-12):
    M, H = x.shape
    I = w1.shape[1]
    tm = _pick_tm(M)
    ic = _pick_ic(I)
    nc = I // ic
    return pl.pallas_call(
        functools.partial(_ffn_kernel, eps=eps),
        out_shape=jax.ShapeDtypeStruct((M, H), x.dtype),
        grid=(M // tm, nc),
        in_specs=[pl.BlockSpec((tm, H), lambda i, c: (i, 0)),
                  pl.BlockSpec((H, ic), lambda i, c: (0, c)),
                  pl.BlockSpec((1, ic), lambda i, c: (0, c)),
                  pl.BlockSpec((ic, H), lambda i, c: (c, 0)),
                  _const_spec((1, H)),
                  _const_spec((1, H)),
                  _const_spec((1, H))],
        out_specs=pl.BlockSpec((tm, H), lambda i, c: (i, 0)),
        scratch_shapes=[pltpu.VMEM((tm, H), jnp.float32)],
        compiler_params=_compiler_params(("parallel", "arbitrary")),
    )(x, w1, b1.reshape(1, I), w2, b2.reshape(1, H),
      gamma.reshape(1, H), beta.reshape(1, H))


def _attention_kernel(qkv_q_ref, qkv_kv_ref, mask_ref, o_ref,
                      *, num_heads, head_dim, scale):
    """Self-attention for one (batch, q-row-tile) grid point.

    Consumes the fused QKV layout [Q | K | V] directly (head columns are
    static slices in the unrolled per-head loop), so only one (tq, S) f32
    score tile is live at a time.  Heads are merged before the store so the
    output last dim is H (lane-dense).
    """
    q_rows = qkv_q_ref[0]          # (tq, 3H) bf16
    kv_rows = qkv_kv_ref[0]        # (S,  3H) bf16
    neg = (1.0 - mask_ref[0].astype(jnp.float32)) * jnp.float32(-1e9)  # (1, S)
    H = num_heads * head_dim

    outs = []
    for h in range(num_heads):     # static unroll; per-head live set only
        q_h = q_rows[:, h * head_dim:(h + 1) * head_dim]
        k_h = kv_rows[:, H + h * head_dim:H + (h + 1) * head_dim]
        v_h = kv_rows[:, 2 * H + h * head_dim:2 * H + (h + 1) * head_dim]
        s = jax.lax.dot_general(q_h, k_h, (((1,), (1,)), ((), ())),
                                preferred_element_type=jnp.float32) * scale
        s = s + neg
        m = jnp.max(s, axis=-1, keepdims=True)
        p = jnp.exp(s - m)
        denom = jnp.sum(p, axis=-1, keepdims=True)
        probs = p * pl.reciprocal(denom, approx=True)      # EUP slot, ~free
        outs.append(jnp.dot(probs.astype(jnp.bfloat16), v_h,
                            preferred_element_type=jnp.float32))
    ctx = jnp.concatenate(outs, axis=-1)                   # (tq, H) lane-dense
    o_ref[0] = ctx.astype(o_ref.dtype)


def attention(qkv, mask, num_heads, out_dtype=None):
    """qkv: (B, S, 3H) fused projections; mask: (B, 1, S) with 1=keep, 0=pad.

    Returns ctx: (B, S, H) with heads already merged (no XLA transposes).
    """
    B, S, threeH = qkv.shape
    H = threeH // 3
    dH = H // num_heads
    tq = _pick_seq_tile(S)
    out_dtype = out_dtype or qkv.dtype
    # TODO(synk): for very long sequences switch the full-S kv block to an
    # online-softmax kv-tile loop (true flash attention); with kv resident the
    # softmax here is still exact over the whole sequence.
    return pl.pallas_call(
        functools.partial(_attention_kernel, num_heads=num_heads, head_dim=dH,
                          scale=1.0 / math.sqrt(dH)),
        out_shape=jax.ShapeDtypeStruct((B, S, H), out_dtype),
        grid=(B, S // tq),
        in_specs=[pl.BlockSpec((1, tq, threeH), lambda b, qi: (b, qi, 0)),
                  pl.BlockSpec((1, S, threeH), lambda b, qi: (b, 0, 0)),
                  pl.BlockSpec((1, 1, S), lambda b, qi: (b, 0, 0))],
        out_specs=pl.BlockSpec((1, tq, H), lambda b, qi: (b, qi, 0)),
        compiler_params=_compiler_params(("parallel", "parallel")),
    )(qkv, qkv, mask)


# --------------------------------------------------------------------------
# Parameter construction (deterministic, synthetic mini-BERT)
# --------------------------------------------------------------------------
def init_params(key, cfg):
    H, I, L = cfg["hidden"], cfg["intermediate"], cfg["layers"]
    V, P = cfg["vocab"], cfg["max_pos"]
    num_labels, max_length = cfg["num_labels"], cfg["max_length"]
    std = 0.02
    bf16 = jnp.bfloat16

    def dense(k, fan_in, fan_out):
        return (jax.random.normal(k, (fan_in, fan_out), jnp.float32) * std,
                jnp.zeros((fan_out,), jnp.float32))

    keys = iter(jax.random.split(key, 8 * L + 16))
    params = {
        "word_emb": jax.random.normal(next(keys), (V, H), jnp.float32) * std,
        "pos_emb": jax.random.normal(next(keys), (P, H), jnp.float32) * std,
        "type_emb": jax.random.normal(next(keys), (2, H), jnp.float32) * std,
        "emb_ln_g": jnp.ones((H,), jnp.float32),
        "emb_ln_b": jnp.zeros((H,), jnp.float32),
        "layers": [],
    }
    for _ in range(L):
        wq, bq = dense(next(keys), H, H)
        wk, bk = dense(next(keys), H, H)
        wv, bv = dense(next(keys), H, H)
        wo, bo = dense(next(keys), H, H)
        w1, b1 = dense(next(keys), H, I)
        w2, b2 = dense(next(keys), I, H)
        # MXU weights pre-cast to bf16 ONCE here (no per-step in-kernel cast).
        params["layers"].append(dict(
            w_qkv=jnp.concatenate([wq, wk, wv], axis=1).astype(bf16),
            b_qkv=jnp.concatenate([bq, bk, bv], axis=0),
            wo=wo.astype(bf16), bo=bo,
            ln1_g=jnp.ones((H,), jnp.float32), ln1_b=jnp.zeros((H,), jnp.float32),
            w1=w1.astype(bf16), b1=b1, w2=w2.astype(bf16), b2=b2,
            ln2_g=jnp.ones((H,), jnp.float32), ln2_b=jnp.zeros((H,), jnp.float32),
        ))
    params["wp"], params["bp"] = dense(next(keys), H, H)              # pooler
    params["wc"], params["bc"] = dense(next(keys), H, num_labels)     # classifier
    params["wfc"], params["bfc"] = dense(next(keys), H, max_length)   # extra FC head
    return params


# --------------------------------------------------------------------------
# Forward pass (mirrors BERTWithFC.forward)
# --------------------------------------------------------------------------
def bert_with_fc_forward(params, cfg, input_ids, attention_mask, labels=None):
    B, S_in = input_ids.shape
    H, nH = cfg["hidden"], cfg["heads"]

    # Pad the sequence to a multiple of 8 (mask-padded) so M = B*S is always
    # tileable (review fix: avoid the tm=M fallback / keep pipelining).
    S = _round_up(max(S_in, 8), 8)
    if S != S_in:
        input_ids = jnp.pad(input_ids, ((0, 0), (0, S - S_in)))
        attention_mask = jnp.pad(attention_mask, ((0, 0), (0, S - S_in)))
    M = B * S

    # ---- embeddings (gather & adds are glue; LN is a Pallas kernel) ----
    x = params["word_emb"][input_ids]                         # (B, S, H) f32
    x = x + params["pos_emb"][:S][None, :, :]
    x = x + params["type_emb"][0][None, None, :]              # token_type_ids = 0
    # Activation stream runs in bf16 from here on; LN stats stay f32 in-kernel.
    h = layernorm(x.reshape(M, H), params["emb_ln_g"], params["emb_ln_b"],
                  out_dtype=jnp.bfloat16)
    # NOTE: dropout is identity in eval mode.

    # un-broadcast mask source; the kernel broadcasts it against the scores
    mask = attention_mask.astype(jnp.float32).reshape(B, 1, S)

    for layer in params["layers"]:
        qkv = linear(h, layer["w_qkv"], layer["b_qkv"])       # (M, 3H) bf16
        # fused-QKV attention; heads split/merged in-kernel, no XLA transposes
        ctx = attention(qkv.reshape(B, S, 3 * H), mask, nH)   # (B, S, H) bf16
        # fused: attn-out projection + residual + LayerNorm
        h = proj_add_layernorm(ctx.reshape(M, H), layer["wo"], layer["bo"], h,
                               layer["ln1_g"], layer["ln1_b"])
        # fused: W1 + GELU + W2 + residual + LayerNorm, streamed over I-chunks
        h = ffn_add_layernorm(h, layer["w1"], layer["b1"], layer["w2"],
                              layer["b2"], layer["ln2_g"], layer["ln2_b"])

    last_hidden_state = h.reshape(B, S, H)[:, :S_in, :]       # hidden_states[-1]
    cls = last_hidden_state[:, 0, :].astype(jnp.float32)      # (B, H)

    # Tiny head GEMMs (rows = B, cols <= H): sub-vreg outputs — plain XLA
    # beats a pallas_call here (launch overhead >> compute).
    pooled = jnp.tanh(cls @ params["wp"] + params["bp"])
    logits = pooled @ params["wc"] + params["bc"]             # (B, num_labels)

    loss = None
    if labels is not None:
        logp = jax.nn.log_softmax(logits, axis=-1)
        loss = -jnp.mean(jnp.take_along_axis(logp, labels[:, None], axis=-1))

    # fc_output = sigmoid(fc(last_hidden_state[:, 0, :]))
    fc_output = jax.nn.sigmoid(cls @ params["wfc"] + params["bfc"])

    outputs = {"loss": loss, "logits": logits,
               "last_hidden_state": last_hidden_state}
    return outputs, fc_output


# --------------------------------------------------------------------------
if __name__ == "__main__":
    cfg = dict(
        vocab=64, max_pos=32, hidden=32, heads=4, intermediate=64, layers=2,
        num_labels=3,          # SNLI: entailment / neutral / contradiction
        max_length=8,
    )
    B, S = 2, cfg["max_length"]

    root = jax.random.PRNGKey(0)
    k_param, k_ids, k_lbl = jax.random.split(root, 3)
    params = init_params(k_param, cfg)

    input_ids = jax.random.randint(k_ids, (B, S), 0, cfg["vocab"], dtype=jnp.int32)
    attention_mask = jnp.array(
        [[1, 1, 1, 1, 1, 1, 1, 1],
         [1, 1, 1, 1, 1, 0, 0, 0]], dtype=jnp.int32)
    labels = jax.random.randint(k_lbl, (B,), 0, cfg["num_labels"], dtype=jnp.int32)

    outputs, fc_output = bert_with_fc_forward(params, cfg, input_ids,
                                              attention_mask, labels=labels)
    jax.block_until_ready((outputs["loss"], outputs["logits"],
                           outputs["last_hidden_state"], fc_output))

    assert outputs["logits"].shape == (B, cfg["num_labels"])
    assert outputs["last_hidden_state"].shape == (B, S, cfg["hidden"])
    assert fc_output.shape == (B, cfg["max_length"])
    assert bool(jnp.all((fc_output >= 0.0) & (fc_output <= 1.0)))
    assert bool(jnp.isfinite(outputs["loss"]))
    print("KERNEL_OK")
</pallas_src>

<mosaic_0001>
module attributes {stable_mosaic.version = 11 : i64} {
  func.func @_copy_probe_kernel(%arg0: i32, %arg1: memref<8x128xf32, #tpu.memory_space<vmem>>, %arg2: memref<8x128xf32, #tpu.memory_space<vmem>>) attributes {dimension_semantics = [#tpu.dimension_semantics<arbitrary>], iteration_bounds = array<i64: 1>, scalar_prefetch = 0 : i64, scratch_operands = 0 : i64, tpu.core_type = #tpu.core_type<tc>, window_params = [{pipeline_mode = #tpu.pipeline_mode<synchronous>, transform_indices = @transform_0, window_bounds = array<i64: 8, 128>}, {pipeline_mode = #tpu.pipeline_mode<synchronous>, transform_indices = @transform_1, window_bounds = array<i64: 8, 128>}]} {
    %c0 = arith.constant 0 : index
    %c0_0 = arith.constant 0 : index
    %0 = vector.load %arg1[%c0, %c0_0] : memref<8x128xf32, #tpu.memory_space<vmem>>, vector<8x128xf32>
    %c0_1 = arith.constant 0 : index
    %c0_2 = arith.constant 0 : index
    %1 = vector.load %arg2[%c0_1, %c0_2] : memref<8x128xf32, #tpu.memory_space<vmem>>, vector<8x128xf32>
    tpu.vector_store %arg2[%c0_1, %c0_2], %0 {strides = array<i32>} : memref<8x128xf32, #tpu.memory_space<vmem>>, vector<8x128xf32>,
    return
  }
  func.func @transform_0(%arg0: i32) -> (i32, i32) {
    %c0_i32 = arith.constant 0 : i32
    %c0_i32_0 = arith.constant 0 : i32
    %c0_i32_1 = arith.constant 0 : i32
    return %c0_i32, %c0_i32_0 : i32, i32
  }
  func.func @transform_1(%arg0: i32) -> (i32, i32) {
    %c0_i32 = arith.constant 0 : i32
    %c0_i32_0 = arith.constant 0 : i32
    %c0_i32_1 = arith.constant 0 : i32
    return %c0_i32, %c0_i32_0 : i32, i32
  }
}

module attributes {stable_mosaic.version = 11 : i64} {
  func.func @_layernorm_kernel(%arg0: i32, %arg1: memref<16x32xf32, #tpu.memory_space<vmem>>, %arg2: memref<1x32xf32, #tpu.memory_space<vmem>>, %arg3: memref<1x32xf32, #tpu.memory_space<vmem>>, %arg4: memref<16x32xbf16, #tpu.memory_space<vmem>>) attributes {dimension_semantics = [#tpu.dimension_semantics<parallel>], iteration_bounds = array<i64: 1>, scalar_prefetch = 0 : i64, scratch_operands = 0 : i64, tpu.core_type = #tpu.core_type<tc>, window_params = [{transform_indices = @transform_0, window_bounds = array<i64: 16, 32>}, {pipeline_mode = #tpu.pipeline_mode<synchronous>, transform_indices = @transform_1, window_bounds = array<i64: 1, 32>}, {pipeline_mode = #tpu.pipeline_mode<synchronous>, transform_indices = @transform_2, window_bounds = array<i64: 1, 32>}, {transform_indices = @transform_3, window_bounds = array<i64: 16, 32>}]} {
    %c0 = arith.constant 0 : index
    %c0_0 = arith.constant 0 : index
    %0 = vector.load %arg1[%c0, %c0_0] : memref<16x32xf32, #tpu.memory_space<vmem>>, vector<16x32xf32>
    %cst = arith.constant dense<0.000000e+00> : vector<16xf32>
    %1 = vector.multi_reduction <add>, %0, %cst [1] : vector<16x32xf32> to vector<16xf32>
    %2 = vector.shape_cast %1 : vector<16xf32> to vector<16x1xf32>
    %cst_1 = arith.constant 3.200000e+01 : f32
    %3 = vector.broadcast %cst_1 : f32 to vector<16x1xf32>
    %4 = arith.divf %2, %3 : vector<16x1xf32>
    %5 = vector.broadcast %4 : vector<16x1xf32> to vector<16x32xf32>
    %6 = arith.subf %0, %5 : vector<16x32xf32>
    %7 = arith.mulf %6, %6 : vector<16x32xf32>
    %cst_2 = arith.constant dense<0.000000e+00> : vector<16xf32>
    %8 = vector.multi_reduction <add>, %7, %cst_2 [1] : vector<16x32xf32> to vector<16xf32>
    %9 = vector.shape_cast %8 : vector<16xf32> to vector<16x1xf32>
    %cst_3 = arith.constant 3.200000e+01 : f32
    %10 = vector.broadcast %cst_3 : f32 to vector<16x1xf32>
    %11 = arith.divf %9, %10 : vector<16x1xf32>
    %12 = vector.broadcast %4 : vector<16x1xf32> to vector<16x32xf32>
    %13 = arith.subf %0, %12 : vector<16x32xf32>
    %cst_4 = arith.constant 9.99999996E-13 : f32
    %14 = vector.broadcast %cst_4 : f32 to vector<16x1xf32>
    %15 = arith.addf %11, %14 : vector<16x1xf32>
    %16 = math.rsqrt %15 : vector<16x1xf32>
    %17 = vector.broadcast %16 : vector<16x1xf32> to vector<16x32xf32>
    %18 = arith.mulf %13, %17 : vector<16x32xf32>
    %c0_5 = arith.constant 0 : index
    %c0_6 = arith.constant 0 : index
    %19 = vector.load %arg2[%c0_5, %c0_6] : memref<1x32xf32, #tpu.memory_space<vmem>>, vector<1x32xf32>
    %20 = vector.broadcast %19 : vector<1x32xf32> to vector<16x32xf32>
    %21 = arith.mulf %18, %20 : vector<16x32xf32>
    %c0_7 = arith.constant 0 : index
    %c0_8 = arith.constant 0 : index
    %22 = vector.load %arg3[%c0_7, %c0_8] : memref<1x32xf32, #tpu.memory_space<vmem>>, vector<1x32xf32>
    %23 = vector.broadcast %22 : vector<1x32xf32> to vector<16x32xf32>
    %24 = arith.addf %21, %23 : vector<16x32xf32>
    %25 = arith.truncf %24 : vector<16x32xf32> to vector<16x32xbf16>
    %c0_9 = arith.constant 0 : index
    %c0_10 = arith.constant 0 : index
    %26 = vector.load %arg4[%c0_9, %c0_10] : memref<16x32xbf16, #tpu.memory_space<vmem>>, vector<16x32xbf16>
    tpu.vector_store %arg4[%c0_9, %c0_10], %25 {strides = array<i32>} : memref<16x32xbf16, #tpu.memory_space<vmem>>, vector<16x32xbf16>,
    return
  }
  func.func @transform_0(%arg0: i32) -> (i32, i32) {
    %c0_i32 = arith.constant 0 : i32
    %c0_i32_0 = arith.constant 0 : i32
    return %arg0, %c0_i32 : i32, i32
  }
  func.func @transform_1(%arg0: i32) -> (i32, i32) {
    %c0_i32 = arith.constant 0 : i32
    %c0_i32_0 = arith.constant 0 : i32
    %c0_i32_1 = arith.constant 0 : i32
    return %c0_i32, %c0_i32_0 : i32, i32
  }
  func.func @transform_2(%arg0: i32) -> (i32, i32) {
    %c0_i32 = arith.constant 0 : i32
    %c0_i32_0 = arith.constant 0 : i32
    %c0_i32_1 = arith.constant 0 : i32
    return %c0_i32, %c0_i32_0 : i32, i32
  }
  func.func @transform_3(%arg0: i32) -> (i32, i32) {
    %c0_i32 = arith.constant 0 : i32
    %c0_i32_0 = arith.constant 0 : i32
    return %arg0, %c0_i32 : i32, i32
  }
}

</mosaic_0001>

<bundles_post_ra>
// kernel: tpu_custom_call.1
= control target key start
LH: loop header
LB: loop body
LE: loop exit
PB: predicated region body
PF: predicated region fallthrough
CT: control target
= control target key end

     0   :  { %6 = vsyncpa [#allocation3], 0  ;;  %s102_s0 = inlined_call_operand.hbm [shape: f32[8,128], index: 0, kind: input, shape index: {}]   ;;  %s103_s1 = inlined_call_operand.hbm [shape: f32[8,128], index: 1, kind: output, shape index: {}]  }
   0x1   :  { %7 = vsyncpa [#allocation4], 0  ;;  %s84_s6 = smov [#allocation2]  }
   0x2   :  { %s14_s7 = sshll.u32 %s84_s6, 4  ;;  %s15_s7 = int_to_ptr.vmem [resolvable:$true] %s14_s7 }
   0x3   :  { %s48_s8 = scalar_lea.vmem %s15_s7, 128  ;;  %p53_p1 = scmp.lt.s32.totalorder %s15_s7, %s15_s7 }
   0x4   :  { %p49_p0 = scmp.ne.s32.totalorder %s15_s7, %s48_s8  ;;  %p54_p2 = scmp.lt.s32.totalorder %s48_s8, %s48_s8 }
   0x6   :  { %p55_p3 = por %p54_p2, %p53_p1 }
   0x8   :  { %p56_p4 = pnand %p55_p3, %p49_p0 }
   0xa   :  { %59 = shalt.err (!%p56_p4)
}
   0xb   :  { %17 = dma.hbm_to_vmem [thread:$0]  %s102_s0, 128, %s15_s7, [#allocation3]  }
   0xc   :  { %80 = dma.done.wait [#allocation3], 128  }
   0xd   :  { %81 = vsyncadd [#allocation3], 4294967168  ;;  %s85_s11 = smov [#allocation5]   ;;  %v21_v0 = vld [vmem:[#allocation2] sm:$0xff] }
   0xe   :  { %s29_s12 = sshll.u32 %s85_s11, 4  ;;  %22 = vst [vmem:[#allocation5] sm:$0xff] %v21_v0  ;;  %s30_s12 = int_to_ptr.vmem [resolvable:$true] %s29_s12 }
   0xf   :  { %s60_s13 = scalar_lea.vmem %s30_s12, 128  ;;  %p65_p6 = scmp.lt.s32.totalorder %s30_s12, %s30_s12 }
  0x10   :  { %p61_p5 = scmp.ne.s32.totalorder %s30_s12, %s60_s13  ;;  %p66_p7 = scmp.lt.s32.totalorder %s60_s13, %s60_s13 }
  0x12   :  { %p67_p8 = por %p66_p7, %p65_p6 }
  0x14   :  { %p68_p9 = pnand %p67_p8, %p61_p5 }
  0x16   :  { %71 = shalt.err (!%p68_p9)
}
  0x17   :  { %32 = dma.vmem_to_hbm [thread:$0]  %s30_s12, 128, %s103_s1, [#allocation4]  }
  0x18   :  { %82 = dma.done.wait [#allocation4], 128  }
  0x19   :  { %83 = vsyncadd [#allocation4], 4294967168 }
  0x1a   :  { %36 = vsyncpa [#allocation3], 1 }
  0x1b   :  { %37 = vsyncpa [#allocation4], 1 }

// kernel: tpu_custom_call.1
= control target key start
LH: loop header
LB: loop body
LE: loop exit
PB: predicated region body
PF: predicated region fallthrough
CT: control target
= control target key end

     0   :  { %8 = vsyncpa [#allocation3], 0  ;;  %s207_s0 = inlined_call_operand.hbm [shape: f32[16,32], index: 0, kind: input, shape index: {}]   ;;  %s208_s1 = inlined_call_operand.vmem [shape: f32[1,32], index: 1, kind: input, shape index: {}]   ;;  %s209_s2 = inlined_call_operand.vmem [shape: f32[1,32], index: 2, kind: input, shape index: {}]   ;;  %s210_s3 = inlined_call_operand.hbm [shape: bf16[16,32], index: 3, kind: output, shape index: {}]  }
   0x1   :  { %9 = vsyncpa [#allocation4], 0  ;;  %s165_s12 = smov [#allocation2]  }
   0x2   :  { %s15_s13 = sshll.u32 %s165_s12, 4  ;;  %s16_s13 = int_to_ptr.vmem [resolvable:$true] %s15_s13 }
   0x3   :  { %s129_s14 = scalar_lea.vmem %s16_s13, 256  ;;  %p134_p1 = scmp.lt.s32.totalorder %s16_s13, %s16_s13 }
   0x4   :  { %p130_p0 = scmp.ne.s32.totalorder %s16_s13, %s129_s14  ;;  %p135_p2 = scmp.lt.s32.totalorder %s129_s14, %s129_s14 }
   0x6   :  { %p136_p3 = por %p135_p2, %p134_p1 }
   0x8   :  { %p137_p4 = pnand %p136_p3, %p130_p0 }
   0xa   :  { %140 = shalt.err (!%p137_p4)
}
   0xb   :  { %s166_s15 = smov 128   ;;  %s167_s16 = smov 8  }
   0xc   :  { %21 = dma.hbm_to_vmem [thread:$0]  %s207_s0, 256, %s16_s13, [#allocation3], %s166_s15, %s166_s15, %s167_s16  }
   0xd   :  { %161 = dma.done.wait [#allocation3], 256  }
   0xe   :  { %162 = vsyncadd [#allocation3], 4294967040  ;;  %vm31_vm0 = vcmask 261120   ;;  %v29_v0 = vld [vmem:[#allocation2] sm:$0xff]  ;;  %v30_v1 = vld [vmem:[#allocation2 + $0x8] sm:$0xff]  ;;  %vm85_vm1 = vcmask 257024  }
   0xf   :  { %v32_v2 = vsel %vm31_vm0, %v29_v0, 0.0  ;;  %v35_v3 = vsel %vm31_vm0, %v30_v1, 0.0  ;;  %v105_v21 = vld [vmem:[%s208_s1] ss:$0 sm:$0xff]  ;;  %s168_s22 = smov [#allocation5]  }
  0x10   :  { %33 = vadd.xlane.f32.xlu0 %v32_v2  ;;  %v106_v23 = vld [vmem:[%s209_s2] ss:$0 sm:$0xff]  ;;  %s93_s23 = sshll.u32 %s168_s22, 4  ;;  %s94_s23 = int_to_ptr.vmem [resolvable:$true] %s93_s23 }
  0x11   :  { %s141_s1 = scalar_lea.vmem %s94_s23, 128  ;;  %p146_p6 = scmp.lt.s32.totalorder %s94_s23, %s94_s23 }
  0x12   :  { %p142_p5 = scmp.ne.s32.totalorder %s94_s23, %s141_s1  ;;  %p147_p7 = scmp.lt.s32.totalorder %s141_s1, %s141_s1 }
  0x14   :  { %36 = vadd.xlane.f32.xlu0 %v35_v3  ;;  %p148_p8 = por %p147_p7, %p146_p6 }
  0x16   :  { %p149_p9 = pnand %p148_p8, %p142_p5 }
  0x99   :  { %v34_v4 = vpop.xlane.xlu0 %33 }
  0x9a   :  { %v39_v5 = vmul.f32 0.03125, %v34_v4 }
  0x9c   :  { %v41_v6 = vsub.f32 %v29_v0, %v39_v5 }
  0x9d   :  { %v37_v7 = vpop.xlane.xlu0 %36 }
  0x9e   :  { %v40_v8 = vmul.f32 0.03125, %v37_v7  ;;  %v43_v9 = vmul.f32 %v41_v6, %v41_v6 }
  0xa0   :  { %v42_v10 = vsub.f32 %v30_v1, %v40_v8  ;;  %v45_v11 = vsel %vm31_vm0, %v43_v9, 0.0 }
  0xa1   :  { %46 = vadd.xlane.f32.xlu1 %v45_v11 }
  0xa2   :  { %v44_v12 = vmul.f32 %v42_v10, %v42_v10 }
  0xa4   :  { %v48_v13 = vsel %vm31_vm0, %v44_v12, 0.0 }
  0xa5   :  { %49 = vadd.xlane.f32.xlu1 %v48_v13 }
 0x12a   :  { %v47_v14 = vpop.xlane.xlu1 %46 }
 0x12b   :  { %v51_v15 = vmul.f32 0.03125, %v47_v14 }
 0x12d   :  { %v53_v16 = vadd.f32 1e-12, %v51_v15 }
 0x12e   :  { %v50_v17 = vpop.xlane.xlu1 %49 }
 0x12f   :  { %117 = vrsqrt.f32 %v53_v16  ;;  %v52_v18 = vmul.f32 0.03125, %v50_v17 }
 0x131   :  { %v54_v19 = vadd.f32 1e-12, %v52_v18 }
 0x133   :  { %119 = vrsqrt.f32 %v54_v19 }
 0x13c   :  { %v118_v20 = vpop.eup %117 }
 0x13d   :  { %v57_v22 = vmul.f32 %v118_v20, %v41_v6 }
 0x13f   :  { %v66_v24 = vmul.f32 %v105_v21, %v57_v22 }
 0x140   :  { %v120_v25 = vpop.eup %119 }
 0x141   :  { %v58_v26 = vmul.f32 %v120_v25, %v42_v10  ;;  %v75_v27 = vadd.f32 %v106_v23, %v66_v24 }
 0x143   :  { %v67_v28 = vmul.f32 %v105_v21, %v58_v26  ;;  %v109_v29 = vpack.c.bf16 %v75_v27, %v75_v27 }
 0x145   :  { %v76_v30 = vadd.f32 %v106_v23, %v67_v28  ;;  %86 = vst.msk [vmem:[#allocation5] sm:$0xf] %vm85_vm1, %v109_v29 }
 0x147   :  { %v110_v31 = vpack.c.bf16 %v76_v30, %v76_v30 }
 0x149   :  { %87 = vst.msk [vmem:[#allocation5 + $0x4] sm:$0xf] %vm85_vm1, %v110_v31 }
 0x14a   :  { %152 = shalt.err (!%p149_p9)
}
 0x14b   :  { %s169_s2 = smov 64   ;;  %s170_s24 = smov 4  }
 0x14c   :  { %99 = dma.vmem_to_hbm [thread:$0]  %s94_s23, 128, %s210_s3, [#allocation4], %s169_s2, %s169_s2, %s170_s24  }
 0x14d   :  { %163 = dma.done.wait [#allocation4], 128  }
 0x14e   :  { %164 = vsyncadd [#allocation4], 4294967168 }
 0x14f   :  { %103 = vsyncpa [#allocation3], 1 }
 0x150   :  { %104 = vsyncpa [#allocation4], 1 }

</bundles_post_ra>
